<compile_context>
chip_gen: v5e
topology: v5e:2x2
jax: 0.10.0
libtpu: 0.0.40
codegen_flags: <defaults>
</compile_context>

<pallas_src>
import jax
import jax.numpy as jnp
from jax.experimental import pallas as pl
from jax.experimental.pallas import tpu as pltpu

BN_EPS = 1e-3


def fused_kernel(x_ref, w_ref, gamma_ref, beta_ref, o_ref):
    # x_ref:     (M, Cin)       bf16 pre-gated activations (resident across the grid)
    # w_ref:     (Cin, TN)      bf16 1x1-conv weight tile (streamed over Cout)
    # gamma_ref: (n_tiles, TN)  f32 BN scale (resident)
    # beta_ref:  (n_tiles, TN)  f32 BN shift (resident)
    # o_ref:     (M, TN)        f32 output tile (lane-dense stores)
    j = pl.program_id(0)

    # 1x1 conv == matmul on the MXU; f32 accumulation.
    y = jnp.dot(x_ref[...], w_ref[...], preferred_element_type=jnp.float32)  # (M, TN)

    # BatchNorm2d (training mode): per-channel stats over all M = N*H*W positions.
    # Two-pass (center first) for numerical safety; y is resident so this is cheap.
    inv_m = 1.0 / y.shape[0]
    mean = jnp.sum(y, axis=0, keepdims=True) * inv_m          # (1, TN)
    yc = y - mean
    var = jnp.sum(yc * yc, axis=0, keepdims=True) * inv_m     # biased variance

    gamma = gamma_ref[pl.ds(j, 1), :]                          # (1, TN), no DMA
    beta = beta_ref[pl.ds(j, 1), :]                            # (1, TN)
    scale = jax.lax.rsqrt(var + BN_EPS) * gamma
    o_ref[...] = (yc * scale + beta).astype(o_ref.dtype)


def _pick_tn(cout, tn):
    """Largest multiple-of-128 tile (<= tn) that divides Cout; falls back to Cout."""
    tn = min(tn, cout)
    if cout % tn == 0 and (tn % 128 == 0 or tn == cout):
        return tn
    cand = (tn // 128) * 128
    while cand >= 128:
        if cout % cand == 0:
            return cand
        cand -= 128
    return cout


def sigmoid_mul_conv1x1_bn(x_nchw, gate_nc11, w_oikk, gamma, beta, *, tn=128):
    """x_nchw: (N, Cin, H, W); gate_nc11: (1, Cin, 1, 1); w_oikk: (Cout, Cin, 1, 1)."""
    N, Cin, H, W = x_nchw.shape
    Cout = w_oikk.shape[0]
    M = N * H * W

    tn = _pick_tn(Cout, tn)
    n_tiles = Cout // tn
    grid = (n_tiles,)

    # ---- Hoisted one-time prep (XLA fuses gating + transpose + cast into one pass) ----
    # Gating is per-input-channel, so applying it to x here is algebraically identical
    # to sigmoid(x851)*x847 followed by the 1x1 conv inside the kernel.
    gate = jax.nn.sigmoid(gate_nc11.astype(jnp.float32))                    # (1, Cin, 1, 1)
    x_g = x_nchw.astype(jnp.float32) * gate                                 # (N, Cin, H, W)
    x2d = jnp.transpose(x_g, (0, 2, 3, 1)).reshape(M, Cin).astype(jnp.bfloat16)  # (M, Cin)

    w2d = jnp.transpose(w_oikk.reshape(Cout, Cin), (1, 0)).astype(jnp.bfloat16)  # (Cin, Cout)
    gamma_t = gamma.astype(jnp.float32).reshape(n_tiles, tn)
    beta_t = beta.astype(jnp.float32).reshape(n_tiles, tn)

    cost = pl.CostEstimate(
        flops=2 * M * Cin * Cout,
        transcendentals=Cout,  # rsqrt per output channel (sigmoid lives in the wrapper)
        bytes_accessed=(x2d.size * 2 + w2d.size * 2
                        + (gamma_t.size + beta_t.size) * 4 + M * Cout * 4),
    )

    out2d = pl.pallas_call(
        fused_kernel,
        out_shape=jax.ShapeDtypeStruct((M, Cout), jnp.float32),
        grid_spec=pltpu.PrefetchScalarGridSpec(
            num_scalar_prefetch=0,
            grid=grid,
            in_specs=[
                pl.BlockSpec((M, Cin), lambda j: (0, 0)),       # x: resident, lane-dense Cin
                pl.BlockSpec((Cin, tn), lambda j: (0, j)),      # weight: streamed over Cout
                pl.BlockSpec((n_tiles, tn), lambda j: (0, 0)),  # gamma: resident
                pl.BlockSpec((n_tiles, tn), lambda j: (0, 0)),  # beta: resident
            ],
            # BN stats require the full M in one block; never tile this axis.
            out_specs=pl.BlockSpec((M, tn), lambda j: (0, j)),
        ),
        compiler_params=pltpu.CompilerParams(
            dimension_semantics=("parallel",),
        ),
        cost_estimate=cost,
    )(x2d, w2d, gamma_t, beta_t)

    # (M, Cout) -> NCHW. Small transpose left to XLA so in-kernel stores stay lane-dense.
    return jnp.transpose(out2d.reshape(N, H, W, Cout), (0, 3, 1, 2))


def reference(x_nchw, gate_nc11, w_oikk, gamma, beta):
    gated = jax.nn.sigmoid(gate_nc11) * x_nchw
    y = jax.lax.conv_general_dilated(
        gated, w_oikk, window_strides=(1, 1), padding="VALID",
        dimension_numbers=("NCHW", "OIHW", "NCHW"))
    mean = jnp.mean(y, axis=(0, 2, 3), keepdims=True)
    var = jnp.mean((y - mean) ** 2, axis=(0, 2, 3), keepdims=True)
    g = gamma.reshape(1, -1, 1, 1)
    b = beta.reshape(1, -1, 1, 1)
    return (y - mean) * jax.lax.rsqrt(var + BN_EPS) * g + b


if __name__ == "__main__":
    # Small shapes consistent with the module (original: N=1, Cin=3840, Cout=640, H=W=7).
    # Cout=256 with tn=128 exercises a 2-step streamed grid.
    N, Cin, Cout, H, W = 1, 384, 256, 7, 7

    key = jax.random.PRNGKey(0)
    k1, k2, k3 = jax.random.split(key, 3)
    x847 = jax.random.normal(k1, (N, Cin, H, W), dtype=jnp.float32)
    x851 = jax.random.normal(k2, (1, Cin, 1, 1), dtype=jnp.float32)
    # Conv2d(Cin, Cout, 1, bias=False) weight, deterministic init.
    w = jax.random.normal(k3, (Cout, Cin, 1, 1), dtype=jnp.float32) * 0.02
    # BatchNorm2d default init: weight=1, bias=0 (BN running-stats update (momentum) is
    # training-time state and does not affect the returned forward output).
    gamma = jnp.ones((Cout,), dtype=jnp.float32)
    beta = jnp.zeros((Cout,), dtype=jnp.float32)

    out = sigmoid_mul_conv1x1_bn(x847, x851, w, gamma, beta, tn=128)
    out = jax.block_until_ready(out)

    ref = jax.block_until_ready(reference(x847, x851, w, gamma, beta))
    assert out.shape == (N, Cout, H, W)
    # bf16 matmul operands -> slightly looser tolerance than a pure-f32 pipeline.
    assert jnp.allclose(out, ref, atol=5e-2, rtol=5e-2)
    print("KERNEL_OK")
</pallas_src>

<mosaic_0001>
module attributes {stable_mosaic.version = 11 : i64} {
  func.func @fused_kernel(%arg0: i32, %arg1: memref<49x384xbf16, #tpu.memory_space<vmem>>, %arg2: memref<384x128xbf16, #tpu.memory_space<vmem>>, %arg3: memref<2x128xf32, #tpu.memory_space<vmem>>, %arg4: memref<2x128xf32, #tpu.memory_space<vmem>>, %arg5: memref<49x128xf32, #tpu.memory_space<vmem>>) attributes {dimension_semantics = [#tpu.dimension_semantics<parallel>], iteration_bounds = array<i64: 2>, scalar_prefetch = 0 : i64, scratch_operands = 0 : i64, tpu.core_type = #tpu.core_type<tc>, window_params = [{pipeline_mode = #tpu.pipeline_mode<synchronous>, transform_indices = @transform_0, window_bounds = array<i64: 49, 384>}, {transform_indices = @transform_1, window_bounds = array<i64: 384, 128>}, {pipeline_mode = #tpu.pipeline_mode<synchronous>, transform_indices = @transform_2, window_bounds = array<i64: 2, 128>}, {pipeline_mode = #tpu.pipeline_mode<synchronous>, transform_indices = @transform_3, window_bounds = array<i64: 2, 128>}, {transform_indices = @transform_4, window_bounds = array<i64: 49, 128>}]} {
    %c0 = arith.constant 0 : index
    %c0_0 = arith.constant 0 : index
    %0 = vector.load %arg1[%c0, %c0_0] : memref<49x384xbf16, #tpu.memory_space<vmem>>, vector<49x384xbf16>
    %c0_1 = arith.constant 0 : index
    %c0_2 = arith.constant 0 : index
    %1 = vector.load %arg2[%c0_1, %c0_2] : memref<384x128xbf16, #tpu.memory_space<vmem>>, vector<384x128xbf16>
    %cst = arith.constant dense<0.000000e+00> : vector<49x128xf32>
    %2 = tpu.matmul %0, %1, %cst {dimension_numbers = #tpu.dot_dimension_numbers<[1], [0], [0], [1], [0, 0, 1, 1], [], []>} : vector<49x384xbf16>, vector<384x128xbf16>, vector<49x128xf32> -> vector<49x128xf32>
    %cst_3 = arith.constant dense<0.000000e+00> : vector<128xf32>
    %3 = vector.multi_reduction <add>, %2, %cst_3 [0] : vector<49x128xf32> to vector<128xf32>
    %4 = vector.shape_cast %3 : vector<128xf32> to vector<1x128xf32>
    %cst_4 = arith.constant 0.0204081628 : f32
    %5 = vector.broadcast %cst_4 : f32 to vector<1x128xf32>
    %6 = arith.mulf %4, %5 : vector<1x128xf32>
    %7 = vector.broadcast %6 : vector<1x128xf32> to vector<49x128xf32>
    %8 = arith.subf %2, %7 : vector<49x128xf32>
    %9 = arith.mulf %8, %8 : vector<49x128xf32>
    %cst_5 = arith.constant dense<0.000000e+00> : vector<128xf32>
    %10 = vector.multi_reduction <add>, %9, %cst_5 [0] : vector<49x128xf32> to vector<128xf32>
    %11 = vector.shape_cast %10 : vector<128xf32> to vector<1x128xf32>
    %cst_6 = arith.constant 0.0204081628 : f32
    %12 = vector.broadcast %cst_6 : f32 to vector<1x128xf32>
    %13 = arith.mulf %11, %12 : vector<1x128xf32>
    %14 = arith.index_cast %arg0 : i32 to index
    %c0_7 = arith.constant 0 : index
    %15 = vector.load %arg3[%14, %c0_7] : memref<2x128xf32, #tpu.memory_space<vmem>>, vector<1x128xf32>
    %16 = arith.index_cast %arg0 : i32 to index
    %c0_8 = arith.constant 0 : index
    %17 = vector.load %arg4[%16, %c0_8] : memref<2x128xf32, #tpu.memory_space<vmem>>, vector<1x128xf32>
    %cst_9 = arith.constant 1.000000e-03 : f32
    %18 = vector.broadcast %cst_9 : f32 to vector<1x128xf32>
    %19 = arith.addf %13, %18 : vector<1x128xf32>
    %20 = math.rsqrt %19 : vector<1x128xf32>
    %21 = arith.mulf %20, %15 : vector<1x128xf32>
    %22 = vector.broadcast %21 : vector<1x128xf32> to vector<49x128xf32>
    %23 = arith.mulf %8, %22 : vector<49x128xf32>
    %24 = vector.broadcast %17 : vector<1x128xf32> to vector<49x128xf32>
    %25 = arith.addf %23, %24 : vector<49x128xf32>
    %c0_10 = arith.constant 0 : index
    %c0_11 = arith.constant 0 : index
    %26 = vector.load %arg5[%c0_10, %c0_11] : memref<49x128xf32, #tpu.memory_space<vmem>>, vector<49x128xf32>
    tpu.vector_store %arg5[%c0_10, %c0_11], %25 {strides = array<i32>} : memref<49x128xf32, #tpu.memory_space<vmem>>, vector<49x128xf32>,
    return
  }
  func.func @transform_0(%arg0: i32) -> (i32, i32) {
    %c0_i32 = arith.constant 0 : i32
    %c0_i32_0 = arith.constant 0 : i32
    %c0_i32_1 = arith.constant 0 : i32
    return %c0_i32, %c0_i32_0 : i32, i32
  }
  func.func @transform_1(%arg0: i32) -> (i32, i32) {
    %c0_i32 = arith.constant 0 : i32
    %c0_i32_0 = arith.constant 0 : i32
    return %c0_i32, %arg0 : i32, i32
  }
  func.func @transform_2(%arg0: i32) -> (i32, i32) {
    %c0_i32 = arith.constant 0 : i32
    %c0_i32_0 = arith.constant 0 : i32
    %c0_i32_1 = arith.constant 0 : i32
    return %c0_i32, %c0_i32_0 : i32, i32
  }
  func.func @transform_3(%arg0: i32) -> (i32, i32) {
    %c0_i32 = arith.constant 0 : i32
    %c0_i32_0 = arith.constant 0 : i32
    %c0_i32_1 = arith.constant 0 : i32
    return %c0_i32, %c0_i32_0 : i32, i32
  }
  func.func @transform_4(%arg0: i32) -> (i32, i32) {
    %c0_i32 = arith.constant 0 : i32
    %c0_i32_0 = arith.constant 0 : i32
    return %c0_i32, %arg0 : i32, i32
  }
}

</mosaic_0001>

<bundles_post_ra>
// kernel: tpu_custom_call.1
= control target key start
LH: loop header
LB: loop body
LE: loop exit
PB: predicated region body
PF: predicated region fallthrough
CT: control target
= control target key end

     0   :  { %s1450_s0 = inlined_call_operand.hbm [shape: bf16[49,384], index: 0, kind: input, shape index: {}]   ;;  %s1451_s1 = inlined_call_operand.hbm [shape: bf16[384,256], index: 1, kind: input, shape index: {}]   ;;  %s1452_s2 = inlined_call_operand.hbm [shape: f32[2,128], index: 2, kind: input, shape index: {}]   ;;  %s1453_s3 = inlined_call_operand.vmem [shape: f32[2,128], index: 3, kind: input, shape index: {}]   ;;  %s1454_s4 = inlined_call_operand.hbm [shape: f32[49,256], index: 4, kind: output, shape index: {}]  }
   0x1   :  { %1455 = sst [smem:[#allocation14_spill]] %s1450_s0 }
   0x2   :  { %1456 = sst [smem:[#allocation15_spill]] %s1452_s2 }
   0x3   :  { %9 = vsyncpa [#allocation3], 0 }
   0x4   :  { %10 = vsyncpa [#allocation6], 0 }
   0x5   :  { %12 = vsyncpa [#allocation6 + $0x1], 0 }
   0x6   :  { %13 = vsyncpa [#allocation4], 0 }
   0x7   :  { %15 = vsyncpa [#allocation4 + $0x1], 0  ;;  %s1261_s15 = smov 0   ;;  %s1263_s16 = smov 0  }
   0x8   :  { %s1265_s17 = smov 0   ;;  %s1267_s18 = smov 0  }
   0x9 LB: > { %s1282_s19 = sadd.s32 4294967295, %s1224_s18   ;;  %s790_s20 = sadd.s32 4294967294, %s1224_s18   ;;  %s1224_s18 = sphi %s1267_s18, %s1471_s18   ;;  %s1220_s17 = sphi %s1265_s17, %s1470_s17   ;;  %s1216_s16 = sphi %s1263_s16, %s1469_s16   ;;  %s1212_s15 = sphi %s1261_s15, %s1468_s15  }
   0xa   : > { %s1286_s21 = sadd.s32 1, %s1224_s18   ;;  %s49_s22 = sadd.s32 1, %s1220_s17 }
   0xb   : > { %s46_s23 = ssub.s32 %s1224_s18, %s1286_s21  ;;  %p56_p0 = scmp.ne.s32.totalorder %s1220_s17, %s1216_s16 }
   0xc   : > { %p47_p1 = scmp.eq.s32.totalorder %s46_s23, 0  ;;  %p57_p2 = scmp.eq.s32.totalorder %s1224_s18, 0 }
   0xd   : > { %p62_p3 = scmp.ne.s32.totalorder %s1216_s16, %s1212_s15  ;;  %p63_p4 = scmp.eq.s32.totalorder %s1282_s19, 0 }
   0xe   : > { %s1298_s24 = scalar_select %p47_p1, %s1220_s17, %s49_s22  }
   0xf   : > { %p1300_p5 = por %p57_p2, %p56_p0  ;;  %p1306_p6 = por %p63_p4, %p62_p3 }
  0x10   : > { %1457 = sst [smem:[#allocation13_spill]] %s1298_s24  ;;  %p128_p7 = scmp.eq.s32.totalorder %s1282_s19, 1 }
  0x11   : > { %p134_p8 = scmp.eq.s32.totalorder %s790_s20, 1  ;;  %p791_p9 = scmp.ge.s32.totalorder %s1224_s18, 1 }
  0x12   : > { %p141_p10 = scmp.lt.s32.totalorder %s1224_s18, 3  ;;  %p1313_p11 = por %p128_p7, %p56_p0 }
  0x13   : > { %p1317_p12 = por %p134_p8, %p62_p3  ;;  %s1463_s2 = sld [smem:[#allocation15_spill]] }
  0x14   : > { %p1321_p13 = pnand %p791_p9, %p141_p10  ;;  %s1226_s7 = smov [#allocation7]  }
  0x15   : > { %s169_s8 = sshll.u32 %s1226_s7, 4  ;;  %p1011_p3 = scmp.lt.s32.totalorder %s1224_s18, 2  ;;  %s170_s8 = int_to_ptr.vmem [resolvable:$true] %s169_s8 }
  0x16   : > { %p994_p1 = pneg %p1321_p13  ;;  %s1464_s0 = sld [smem:[#allocation14_spill]] }
  0x17   : > { %p1339_p7 = pnand %p1011_p3, %p1300_p5  ;;  %s1227_s13 = smov [#allocation2]  }
  0x18   : > { %p995_p2 = pnand %p994_p1, %p63_p4  ;;  %s154_s14 = sshll.u32 %s1227_s13, 4  ;;  %s155_s14 = int_to_ptr.vmem [resolvable:$true] %s154_s14 }
  0x19   : > { %s167_s6 = sshll.u32 %s1463_s2, 4  ;;  %s183_s20 = sand.u32 1, %s1224_s18   ;;  %s168_s6 = int_to_ptr.hbm [resolvable:$true] %s167_s6 }
  0x1a   : > { %1000 = dma.hbm_to_vmem [thread:$0]  (!%p995_p2), %s168_s6, 32, %s170_s8, [#allocation6]  }
  0x1b   : > { %s1228_s22 = smov 192   ;;  %s1229_s23 = smov 12  }
  0x1c   : > { %s152_s11 = sshll.u32 %s1464_s0, 4  ;;  %s185_s30 = sand.u32 1, %s1220_s17   ;;  %s153_s11 = int_to_ptr.hbm [resolvable:$true] %s152_s11 }
  0x1d   : > { %997 = dma.hbm_to_vmem [thread:$0]  (!%p995_p2), %s153_s11, 1344, %s155_s14, [#allocation3], %s1228_s22, %s1228_s22, %s1229_s23  }
  0x1e   : > { %s979_s5 = smul.u32 192, %s185_s30  ;;  %s795_s7 = sshll.u32 %s1224_s18, 2 }
  0x1f   : > { %s191_s6 = scalar_lea.hbm %s1451_s1, %s795_s7  ;;  %s184_s2 = scalar_lea.sflag [#allocation6], %s183_s20 }
  0x20   : > { %s192_s25 = sshll.u32 %s191_s6, 4  ;;  %s187_s8 = scalar_lea.vmem [#allocation5], %s979_s5  ;;  %s193_s25 = int_to_ptr.hbm [resolvable:$true] %s192_s25 }
  0x21   : > { %s194_s0 = sshll.u32 %s187_s8, 4  ;;  %s1120_s13 = sshra.s32 %s193_s25, 4  ;;  %s195_s0 = int_to_ptr.vmem [resolvable:$true] %s194_s0  ;;  %s1121_s13 = int_to_ptr.hbm [resolvable:$true] %s1120_s13 }
  0x22   : > { %s1122_s24 = scalar_lea.hbm %s1121_s13, 192  ;;  %p1124_p8 = pneg %p1339_p7 }
  0x23   : > { %p1123_p5 = scmp.ne.s32.totalorder %s1121_s13, %s1122_s24  ;;  %s1127_s22 = scalar_lea.hbm %s1451_s1, 384 }
  0x24   : > { %p1128_p1 = scmp.lt.s32.totalorder %s1121_s13, %s1451_s1  ;;  %p1129_p2 = scmp.lt.s32.totalorder %s1127_s22, %s1122_s24 }
  0x25   : > { %p1125_p9 = pnand %p1124_p8, %p1123_p5 }
  0x26   : > { %p1130_p3 = por %p1129_p2, %p1128_p1 }
  0x27   : > { %p1126_p10 = pneg %p1125_p9 }
  0x29   : > { %p1131_p0 = pnand %p1130_p3, %p1126_p10 }
  0x2b   : > { %1134 = shalt.err (!%p1131_p0)
}
  0x2c   : > { %s1230_s20 = smov 128   ;;  %s1231_s5 = smov 64  }
  0x2d   : > { %s1232_s7 = smov 4   ;;  %206 = sbr.rel (%p1321_p13) target bundleno = 360 (0x168), region = 36 }
  0x2e   : > { %1004 = dma.hbm_to_vmem [thread:$0]  (!%p1339_p7), %s193_s25, 3072, %s195_s0, %s184_s2, %s1230_s20, %s1231_s5, %s1232_s7  }
  0x32   : > { %1195 = dma.done.wait (%p63_p4), [#allocation3], 1344  }
  0x33   : > { %1197 = vsyncadd (%p63_p4), [#allocation3], 4294965952  ;;  %s213_s24 = sand.u32 1, %s1282_s19   ;;  %s1367_s9 = sand.u32 1, %s1216_s16  }
  0x34   : > { %s980_s10 = smul.u32 192, %s1367_s9  ;;  %s214_s6 = scalar_lea.sflag [#allocation6], %s213_s24 }
  0x36   : > { %s1370_s12 = scalar_lea.vmem [#allocation5], %s980_s10 }
  0x37   : > { %1199 = dma.done.wait (%p1306_p6), %s214_s6, 3072  }
  0x38   : > { %1201 = vsyncadd (%p1306_p6), %s214_s6, 4294964224 }
  0x39   : > { %1203 = dma.done.wait (%p63_p4), [#allocation6], 32  }
  0x3a   : > { %1205 = vsyncadd (%p63_p4), [#allocation6], 4294967264  ;;  %v951_v0 = vld [vmem:[%s1370_s12 + $0x38] sm:$0xff]  ;;  %v950_v3 = vld [vmem:[%s1370_s12 + $0x30] sm:$0xff]  ;;  %s642_s26 = scalar_lea.vmem %s1453_s3, %s1282_s19  ;;  %vm602_vm0 = vcmask 1040384   ;;  %s968_s29 = scalar_lea.vmem [#allocation7], %s1224_s18 }
  0x3b   : > { %v959_v1 = vld [vmem:[%s1370_s12 + $0x78] sm:$0xff]  ;;  %513 = vmatpush.bf16.msra.mxu0 %v951_v0  ;;  %v958_v4 = vld [vmem:[%s1370_s12 + $0x70] sm:$0xff]  ;;  %971 = vmatpush.bf16.msra.mxu3 %v951_v0  ;;  %v949_v6 = vld [vmem:[%s1370_s12 + $0x28] sm:$0xff]  ;;  %s981_s25 = smul.u32 56, %s1367_s9  ;;  %s932_s11 = sshll.u32 %s1282_s19, 3 }
  0x3c   : > { %v967_v2 = vld [vmem:[%s1370_s12 + $0xb8] sm:$0xff]  ;;  %541 = vmatpush.bf16.msra.mxu1 %v959_v1  ;;  %v966_v5 = vld [vmem:[%s1370_s12 + $0xb0] sm:$0xff]  ;;  %v957_v7 = vld [vmem:[%s1370_s12 + $0x68] sm:$0xff]  ;;  %s690_s23 = scalar_lea.hbm %s1454_s4, %s932_s11  ;;  %s680_s5 = scalar_lea.sflag [#allocation4], %s1367_s9 }
  0x3d   : > { %569 = vmatpush.bf16.msra.mxu2 %v967_v2  ;;  %v965_v8 = vld [vmem:[%s1370_s12 + $0xa8] sm:$0xff]  ;;  %v948_v9 = vld [vmem:[%s1370_s12 + $0x20] sm:$0xff]  ;;  %v947_v12 = vld [vmem:[%s1370_s12 + $0x18] sm:$0xff]  ;;  %s247_s30 = scalar_lea.vmem [#allocation8], %s981_s25  ;;  %s693_s19 = sshll.u32 %s690_s23, 4  ;;  %s694_s19 = int_to_ptr.hbm [resolvable:$true] %s693_s19 }
  0x3e   : > { %v956_v10 = vld [vmem:[%s1370_s12 + $0x60] sm:$0xff]  ;;  %v955_v13 = vld [vmem:[%s1370_s12 + $0x58] sm:$0xff]  ;;  %v946_v15 = vld [vmem:[%s1370_s12 + $0x10] sm:$0xff]  ;;  %s691_s20 = sshll.u32 %s247_s30, 4  ;;  %s1164_s7 = sshra.s32 %s694_s19, 4  ;;  %s692_s20 = int_to_ptr.vmem [resolvable:$true] %s691_s20  ;;  %s1165_s7 = int_to_ptr.hbm [resolvable:$true] %s1164_s7 }
  0x3f   : > { %514 = vmatpush.bf16.msra.mxu0 %v950_v3  ;;  %972 = vmatpush.bf16.msra.mxu3 %v950_v3  ;;  %v964_v11 = vld [vmem:[%s1370_s12 + $0xa0] sm:$0xff]  ;;  %v963_v14 = vld [vmem:[%s1370_s12 + $0x98] sm:$0xff]  ;;  %v954_v16 = vld [vmem:[%s1370_s12 + $0x50] sm:$0xff]  ;;  %s1166_s24 = scalar_lea.hbm %s1165_s7, 56  ;;  %p1171_p0 = scmp.lt.s32.totalorder %s1165_s7, %s1454_s4 }
  0x40   : > { %542 = vmatpush.bf16.msra.mxu1 %v958_v4  ;;  %v962_v17 = vld [vmem:[%s1370_s12 + $0x90] sm:$0xff]  ;;  %v945_v18 = vld [vmem:[%s1370_s12 + $0x8] sm:$0xff]  ;;  %v944_v21 = vld [vmem:[%s1370_s12] sm:$0xff]  ;;  %p1167_p4 = scmp.ne.s32.totalorder %s1165_s7, %s1166_s24 }
  0x41   : > { %570 = vmatpush.bf16.msra.mxu2 %v966_v5  ;;  %v953_v19 = vld [vmem:[%s1370_s12 + $0x48] sm:$0xff]  ;;  %v952_v22 = vld [vmem:[%s1370_s12 + $0x40] sm:$0xff]  ;;  %v936_v25 = vld [vmem:[#allocation2 + $0x8] sm:$0xf0] }
  0x42   : > { %v961_v20 = vld [vmem:[%s1370_s12 + $0x88] sm:$0xff]  ;;  %v960_v23 = vld [vmem:[%s1370_s12 + $0x80] sm:$0xff]  ;;  %v935_v26 = vld [vmem:[#allocation2 + $0x4] sm:$0xf]  ;;  %p1168_p6 = pnand %p1167_p4, %p1313_p11  ;;  %s1170_s12 = scalar_lea.hbm %s1454_s4, 112 }
  0x43   : > { %515 = vmatpush.bf16.msra.mxu0 %v949_v6  ;;  %973 = vmatpush.bf16.msra.mxu3 %v949_v6  ;;  %v801_v24 = vld [vmem:[#allocation2] sm:$0xf]  ;;  %v803_v27 = vld [vmem:[#allocation2 + $0xc] sm:$0xf0]  ;;  %v809_v28 = vld [vmem:[#allocation2 + $0x8] sm:$0xf]  ;;  %p1172_p7 = scmp.lt.s32.totalorder %s1170_s12, %s1166_s24 }
  0x44   : > { %543 = vmatpush.bf16.msra.mxu1 %v957_v7  ;;  %v937_v29 = vld [vmem:[#allocation2 + $0x10] sm:$0xf0]  ;;  %v813_v30 = vld [vmem:[#allocation2 + $0x18] sm:$0xf]  ;;  %v939_v31 = vld [vmem:[#allocation2 + $0x20] sm:$0xf0]  ;;  %v802_v32 = vor.u32 %v936_v25, %v801_v24  ;;  %v806_v33 = vor.u32 %v935_v26, %v803_v27  ;;  %p1169_p13 = pneg %p1168_p6 }
  0x45   : > { %571 = vmatpush.bf16.msra.mxu2 %v965_v8  ;;  %v810_v34 = vor.u32 %v937_v29, %v809_v28  ;;  %v814_v35 = vor.u32 %v939_v31, %v813_v30  ;;  %v938_v36 = vld [vmem:[#allocation2 + $0x1c] sm:$0xf]  ;;  %v815_v37 = vld [vmem:[#allocation2 + $0x24] sm:$0xf0]  ;;  %v821_v38 = vld [vmem:[#allocation2 + $0x20] sm:$0xf]  ;;  %p1173_p5 = por %p1172_p7, %p1171_p0 }
  0x46   : > { %v940_v39 = vld [vmem:[#allocation2 + $0x28] sm:$0xf0]  ;;  %v825_v40 = vld [vmem:[#allocation2 + $0x30] sm:$0xf]  ;;  %v942_v41 = vld [vmem:[#allocation2 + $0x38] sm:$0xf0]  ;;  %v818_v42 = vor.u32 %v938_v36, %v815_v37 }
  0x47   : > { %516 = vmatpush.bf16.msra.mxu0 %v948_v9  ;;  %974 = vmatpush.bf16.msra.mxu3 %v948_v9  ;;  %v822_v43 = vor.u32 %v940_v39, %v821_v38  ;;  %v826_v44 = vor.u32 %v942_v41, %v825_v40  ;;  %v260_v45 = vld [vmem:[#allocation2 + $0x48] sm:$0x11]  ;;  %v941_v46 = vld [vmem:[#allocation2 + $0x34] sm:$0xf]  ;;  %v827_v47 = vld [vmem:[#allocation2 + $0x3c] sm:$0xf0]  ;;  %p1174_p8 = pnand %p1173_p5, %p1169_p13 }
  0x48   : > { %544 = vmatpush.bf16.msra.mxu1 %v956_v10  ;;  %v342_v48 = vunpack.c.l.b16 %v260_v45  ;;  %v833_v49 = vld [vmem:[#allocation2 + $0x38] sm:$0xf]  ;;  %v943_v50 = vld [vmem:[#allocation2 + $0x40] sm:$0xf0]  ;;  %v830_v51 = vor.u32 %v941_v46, %v827_v47  ;;  %v261_v54 = vld [vmem:[#allocation2 + $0x50] sm:$0x1]  ;;  %v343_v55 = vunpack.c.h.b16 %v260_v45 }
  0x49   : > { %572 = vmatpush.bf16.msra.mxu2 %v964_v11  ;;  %v834_v52 = vor.u32 %v943_v50, %v833_v49  ;;  %v344_v56 = vunpack.c.l.b16 %v261_v54 }
  0x4a   : > { %v354_v53 = vpack.c.b16 %v342_v48, %v342_v48  ;;  %v355_v57 = vpack.c.b16 %v343_v55, %v343_v55 }
  0x4b   : > { %517 = vmatpush.bf16.msra.mxu0 %v947_v12  ;;  %975 = vmatpush.bf16.msra.mxu3 %v947_v12  ;;  %v356_v58 = vpack.c.b16 %v344_v56, %v344_v56 }
  0x4c   : > { %545 = vmatpush.bf16.msra.mxu1 %v955_v13 }
  0x4d   : > { %573 = vmatpush.bf16.msra.mxu2 %v963_v14 }
  0x4f   : > { %518 = vmatpush.bf16.msra.mxu0 %v946_v15  ;;  %976 = vmatpush.bf16.msra.mxu3 %v946_v15 }
  0x50   : > { %546 = vmatpush.bf16.msra.mxu1 %v954_v16 }
  0x51   : > { %574 = vmatpush.bf16.msra.mxu2 %v962_v17 }
  0x53   : > { %519 = vmatpush.bf16.msra.mxu0 %v945_v18  ;;  %977 = vmatpush.bf16.msra.mxu3 %v945_v18 }
  0x54   : > { %547 = vmatpush.bf16.msra.mxu1 %v953_v19 }
  0x55   : > { %575 = vmatpush.bf16.msra.mxu2 %v961_v20 }
  0x57   : > { %520 = vmatpush.bf16.msra.mxu0 %v944_v21  ;;  %978 = vmatpush.bf16.msra.mxu3 %v944_v21 }
  0x58   : > { %548 = vmatpush.bf16.msra.mxu1 %v952_v22 }
  0x59   : > { %576 = vmatpush.bf16.msra.mxu2 %v960_v23 }
  0x5a   : > { %521 = vmatmul.bf16.vlgmr.msra.gmra.mxu0 %v802_v32  ;;  %526 = vmatmul.bf16.vlgmr.msra.gmra.mxu3 %v814_v35 }
  0x5b   : > { %549 = vmatmul.bf16.vlgmr.msra.gmra.mxu1 %v806_v33 }
  0x5c   : > { %577 = vmatmul.bf16.vlgmr.msra.gmra.mxu2 %v810_v34 }
  0x6a   : > { %531 = vmatmul.bf16.gmra.mxu3 %v826_v44 }
  0x6b   : > { %554 = vmatmul.bf16.gmra.mxu1 %v818_v42 }
  0x6c   : > { %582 = vmatmul.bf16.gmra.mxu2 %v822_v43 }
  0x7a   : > { %536 = vmatmul.bf16.gmra.mxu3 %v354_v53 }
  0x7b   : > { %559 = vmatmul.bf16.gmra.mxu1 %v830_v51 }
  0x7c   : > { %587 = vmatmul.bf16.gmra.mxu2 %v834_v52 }
  0x8b   : > { %564 = vmatmul.bf16.gmra.mxu1 %v355_v57 }
  0x8c   : > { %592 = vmatmul.bf16.gmra.mxu2 %v356_v58 }
  0xd7   : > { %v522_v5 = vpop.f32.mrf.mxu0 }
  0xd8   : > { %v550_v59 = vpop.f32.mrf.mxu1 }
  0xd9   : > { %v551_v13 = vadd.f32 %v550_v59, %v522_v5 }
  0xdd   : > { %v527_v61 = vpop.f32.mrf.mxu3 }
  0xdf   : > { %v578_v60 = vpop.f32.mrf.mxu2  ;;  %v524_v11 = vpop.f32.mrf.mxu0 }
  0xe0   : > { %v552_v62 = vpop.f32.mrf.mxu1  ;;  %v579_v17 = vadd.f32 %v578_v60, %v551_v13 }
  0xe1   : > { %v553_v14 = vadd.f32 %v552_v62, %v524_v11 }
  0xe5   : > { %v529_v0 = vpop.f32.mrf.mxu3 }
  0xe7   : > { %v580_v63 = vpop.f32.mrf.mxu2 }
  0xe8   : > { %v555_v1 = vpop.f32.mrf.mxu1  ;;  %v581_v16 = vadd.f32 %v580_v63, %v553_v14 }
  0xe9   : > { %v556_v15 = vadd.f32 %v555_v1, %v527_v61 }
  0xea   : > { %v597_v24 = vadd.f32 %v581_v16, %v579_v17 }
  0xed   : > { %v532_v3 = vpop.f32.mrf.mxu3 }
  0xef   : > { %v583_v2 = vpop.f32.mrf.mxu2 }
  0xf0   : > { %v557_v4 = vpop.f32.mrf.mxu1  ;;  %v584_v18 = vadd.f32 %v583_v2, %v556_v15 }
  0xf1   : > { %v558_v19 = vadd.f32 %v557_v4, %v529_v0 }
  0xf2   : > { %v598_v26 = vadd.f32 %v597_v24, %v584_v18 }
  0xf5   : > { %v534_v7 = vpop.f32.mrf.mxu3 }
  0xf7   : > { %v585_v6 = vpop.f32.mrf.mxu2 }
  0xf8   : > { %v560_v8 = vpop.f32.mrf.mxu1  ;;  %v586_v25 = vadd.f32 %v585_v6, %v558_v19 }
  0xf9   : > { %v561_v20 = vadd.f32 %v560_v8, %v532_v3 }
  0xfa   : > { %v599_v30 = vadd.f32 %v598_v26, %v586_v25 }
  0xfd   : > { %v537_v10 = vpop.f32.mrf.mxu3 }
  0xff   : > { %v588_v9 = vpop.f32.mrf.mxu2 }
 0x100   : > { %v562_v12 = vpop.f32.mrf.mxu1  ;;  %v589_v27 = vadd.f32 %v588_v9, %v561_v20 }
 0x101   : > { %v563_v28 = vadd.f32 %v562_v12, %v534_v7 }
 0x102   : > { %v600_v32 = vadd.f32 %v599_v30, %v589_v27 }
 0x105   : > { %v539_v22 = vpop.f32.mrf.mxu3 }
 0x106   : > { %v1057_v22 = vld [vmem:[%s642_s26] ss:$0 sm:$0xff] }
 0x107   : > { %v590_v21 = vpop.f32.mrf.mxu2 }
 0x108   : > { %v565_v23 = vpop.f32.mrf.mxu1  ;;  %v591_v31 = vadd.f32 %v590_v21, %v563_v28 }
 0x109   : > { %v566_v29 = vadd.f32 %v565_v23, %v537_v10 }
 0x10a   : > { %v601_v36 = vadd.f32 %v600_v32, %v591_v31 }
 0x10f   : > { %v593_v33 = vpop.f32.mrf.mxu2 }
 0x110   : > { %v594_v34 = vadd.f32 %v593_v33, %v566_v29  ;;  %v567_v35 = vpop.f32.mrf.mxu1 }
 0x112   : > { %v603_v37 = vsel %vm602_vm0, %v594_v34, 0.0 }
 0x113   : > { %v604_v38 = vadd.f32 %v603_v37, %v601_v36 }
 0x115   : > { %v605_v39 = vrot.slane %v604_v38, 4 }
 0x117   : > { %v606_v40 = vadd.f32 %v605_v39, %v604_v38  ;;  %v595_v41 = vpop.f32.mrf.mxu2 }
 0x119   : > { %v607_v42 = vrot.slane %v606_v40, 2 }
 0x11b   : > { %v608_v43 = vadd.f32 %v607_v42, %v606_v40 }
 0x11d   : > { %v609_v44 = vrot.slane %v608_v43, 1 }
 0x11f   : > { %v610_v45 = vadd.f32 %v609_v44, %v608_v43 }
 0x121   : > { %v611_v46 = vmul.f32 0.020408163, %v610_v45 }
 0x123   : > { %v612_v47 = vsub.f32 %v579_v17, %v611_v46  ;;  %v613_v48 = vsub.f32 %v581_v16, %v611_v46  ;;  %v614_v49 = vsub.f32 %v584_v18, %v611_v46  ;;  %v615_v50 = vsub.f32 %v586_v25, %v611_v46  ;;  %v970_v17 = vld [vmem:[%s968_s29 - $0x1] sm:$0x1] }
 0x124   : > { %v616_v53 = vsub.f32 %v589_v27, %v611_v46  ;;  %v618_v56 = vsub.f32 %v594_v34, %v611_v46  ;;  %v617_v57 = vsub.f32 %v591_v31, %v611_v46 }
 0x125   : > { %v619_v51 = vmul.f32 %v612_v47, %v612_v47  ;;  %v620_v52 = vmul.f32 %v613_v48, %v613_v48  ;;  %v621_v54 = vmul.f32 %v614_v49, %v614_v49  ;;  %v622_v58 = vmul.f32 %v615_v50, %v615_v50 }
 0x126   : > { %v623_v60 = vmul.f32 %v616_v53, %v616_v53  ;;  %v625_v62 = vmul.f32 %v618_v56, %v618_v56  ;;  %v624_v63 = vmul.f32 %v617_v57, %v617_v57 }
 0x127   : > { %v626_v55 = vadd.f32 %v620_v52, %v619_v51 }
 0x128   : > { %v631_v2 = vsel %vm602_vm0, %v625_v62, 0.0 }
 0x129   : > { %v627_v59 = vadd.f32 %v626_v55, %v621_v54 }
 0x12b   : > { %v628_v61 = vadd.f32 %v627_v59, %v622_v58 }
 0x12d   : > { %v629_v0 = vadd.f32 %v628_v61, %v623_v60 }
 0x12f   : > { %v630_v1 = vadd.f32 %v629_v0, %v624_v63 }
 0x131   : > { %v632_v3 = vadd.f32 %v631_v2, %v630_v1 }
 0x133   : > { %v633_v4 = vrot.slane %v632_v3, 4 }
 0x135   : > { %v634_v5 = vadd.f32 %v633_v4, %v632_v3 }
 0x137   : > { %v635_v6 = vrot.slane %v634_v5, 2 }
 0x139   : > { %v636_v7 = vadd.f32 %v635_v6, %v634_v5 }
 0x13b   : > { %v637_v8 = vrot.slane %v636_v7, 1 }
 0x13d   : > { %v638_v9 = vadd.f32 %v637_v8, %v636_v7 }
 0x13f   : > { %v639_v10 = vmul.f32 0.020408163, %v638_v9 }
 0x141   : > { %v644_v11 = vadd.f32 0.001, %v639_v10 }
 0x143   : > { %1058 = vrsqrt.f32 %v644_v11  ;;  %vm651_vm2 = vweird.f32 %v644_v11 }
 0x149   : > { %v1059_v12 = vpop.eup %1058 }
 0x14a   : > { %v646_v13 = vmul.f32 %v1059_v12, %v644_v11  ;;  %vm652_vm1 = vweird.f32 %v1059_v12 }
 0x14b   : > { %vm653_vm3 = vmor %vm651_vm2, %vm652_vm1 }
 0x14c   : > { %v647_v14 = vmul.f32 %v1059_v12, %v646_v13 }
 0x14e   : > { %v648_v15 = vmul.f32 0.5, %v647_v14 }
 0x150   : > { %v649_v16 = vsub.f32 1.5, %v648_v15 }
 0x152   : > { %v650_v18 = vmul.f32 %v1059_v12, %v649_v16 }
 0x154   : > { %v654_v19 = vsel %vm653_vm3, %v1059_v12, %v650_v18 }
 0x155   : > { %v655_v20 = vmul.f32 %v970_v17, %v654_v19 }
 0x157   : > { %v656_v21 = vperm.slane %v655_v20, 0 }
 0x159   : > { %v657_v23 = vmul.f32 %v656_v21, %v612_v47  ;;  %v658_v24 = vmul.f32 %v656_v21, %v613_v48  ;;  %v659_v25 = vmul.f32 %v656_v21, %v614_v49  ;;  %v660_v26 = vmul.f32 %v656_v21, %v615_v50 }
 0x15a   : > { %v661_v27 = vmul.f32 %v656_v21, %v616_v53  ;;  %v662_v28 = vmul.f32 %v656_v21, %v617_v57  ;;  %v663_v29 = vmul.f32 %v656_v21, %v618_v56 }
 0x15b   : > { %v665_v30 = vadd.f32 %v1057_v22, %v657_v23  ;;  %v666_v31 = vadd.f32 %v1057_v22, %v658_v24  ;;  %v667_v32 = vadd.f32 %v1057_v22, %v659_v25  ;;  %v668_v33 = vadd.f32 %v1057_v22, %v660_v26 }
 0x15c   : > { %v669_v34 = vadd.f32 %v1057_v22, %v661_v27  ;;  %v670_v35 = vadd.f32 %v1057_v22, %v662_v28  ;;  %v671_v36 = vadd.f32 %v1057_v22, %v663_v29 }
 0x15d   : > { %672 = vst [vmem:[%s247_s30] sm:$0xff] %v665_v30 }
 0x15e   : > { %673 = vst [vmem:[%s247_s30 + $0x8] sm:$0xff] %v666_v31 }
 0x15f   : > { %674 = vst [vmem:[%s247_s30 + $0x10] sm:$0xff] %v667_v32 }
 0x160   : > { %675 = vst [vmem:[%s247_s30 + $0x18] sm:$0xff] %v668_v33 }
 0x161   : > { %676 = vst [vmem:[%s247_s30 + $0x20] sm:$0xff] %v669_v34 }
 0x162   : > { %677 = vst [vmem:[%s247_s30 + $0x28] sm:$0xff] %v670_v35 }
 0x163   : > { %678 = vst [vmem:[%s247_s30 + $0x30] sm:$0x1] %v671_v36 }
 0x164   : > { %1177 = shalt.err (!%p1174_p8)
}
 0x165   : > { %s1233_s9 = smov 128   ;;  %s1234_s26 = smov 256  }
 0x166   : > { %s1235_s29 = smov 8  }
 0x167   : > { %992 = dma.vmem_to_hbm [thread:$0]  (%p1313_p11), %s692_s20, 896, %s694_s19, %s680_s5, %s1233_s9, %s1234_s26, %s1235_s29  }
 0x168 PF: > { %s708_s25 = sand.u32 1, %s1212_s15   ;;  %p1466_p9 = scmp.ge.s32.totalorder %s1224_s18, 2 }
 0x169   : > { %s709_s8 = scalar_lea.sflag [#allocation4], %s708_s25 }
 0x16a   : > { %p1006_p10 = pnand %p1466_p9, %p1317_p12 }
 0x16c   : > { %p1007_p1 = pneg %p1006_p10 }
 0x16e   : > { %1207 = dma.done.wait (%p1007_p1), %s709_s8, 896  }
 0x16f   : > { %1209 = vsyncadd (%p1007_p1), %s709_s8, 4294966400  ;;  %s1467_s13 = sld [smem:[#allocation13_spill]]  ;;  %p18_p2 = scmp.ge.s32.totalorder %s1286_s21, 4  }
 0x170   : > { %s1468_s15 = smov %s1216_s16  ;;  %s1469_s16 = smov %s1220_s17 }
 0x171   : > { %s1471_s18 = smov %s1286_s21  ;;  %20 = sbr.rel (!%p18_p2) target bundleno = 9 (0x9), region = 92 }
 0x175   : > { %s1470_s17 = smov %s1467_s13 }
 0x176   :  { %715 = vsyncpa [#allocation3], 1 }
 0x177   :  { %717 = vsyncpa [#allocation3 + $0x1], 1 }
 0x178   :  { %718 = vsyncpa [#allocation6], 1 }
 0x179   :  { %720 = vsyncpa [#allocation6 + $0x1], 1 }
 0x17a   :  { %721 = vsyncpa [#allocation4], 1 }
 0x17b   :  { %723 = vsyncpa [#allocation4 + $0x1], 1 }

</bundles_post_ra>
